<compile_context>
chip_gen: v6e
topology: v6e:2x2x1
jax: 0.10.0
libtpu: 0.0.40
codegen_flags: <defaults>
</compile_context>

<pallas_src>
import math

import jax
import jax.numpy as jnp
from jax import lax
from jax.experimental import pallas as pl
from jax.experimental.pallas import tpu as pltpu


def _round_up(x, m):
    return (x + m - 1) // m * m


def _cdiv(a, b):
    return -(-a // b)


def _sublane(dtype):
    # second-to-last-dim granularity: f32 -> 8, bf16 -> 16, int8/fp8 -> 32
    return 32 // jnp.dtype(dtype).itemsize


def _padded_tile_bytes(rows, cols, dtype):
    # VMEM tile footprint including (sublane, lane) layout padding.
    return (
        _round_up(rows, _sublane(dtype))
        * _round_up(cols, 128)
        * jnp.dtype(dtype).itemsize
    )


def _kernel_chunked(x_ref, w_ref, o_ref):
    # d_hidden % 128 == 0 path.
    #   x: (tile_n, D), w: (1, tile_m*D), o: (tile_n, tile_m*D)
    # Per-m chunk stores: every store is full-width (D is a multiple of 128)
    # at a 128-aligned lane offset; x never leaves its lanes (no replicate).
    x = x_ref[...]
    d = x_ref.shape[-1]
    tile_m = w_ref.shape[-1] // d

    if tile_m <= 32:
        # Static unroll with static lane offsets (common case: mp_dim 2..32).
        for m in range(tile_m):
            off = m * d
            wc = w_ref[:, pl.ds(off, d)]                    # (1, D)
            o_ref[:, pl.ds(off, d)] = (x * wc).astype(o_ref.dtype)
    else:
        def body(m, carry):
            off = pl.multiple_of(m * d, 128)
            wc = w_ref[:, pl.ds(off, d)]
            o_ref[:, pl.ds(off, d)] = (x * wc).astype(o_ref.dtype)
            return carry

        lax.fori_loop(0, tile_m, body, 0)


def _kernel_replicate(x_ref, w_ref, o_ref):
    # d_hidden not a multiple of 128: replicate x along lanes (XLU work that
    # stays in vregs) and do one full-width multiply + store of the flat slab.
    #   out[n, m*D + d] = x[n, d] * w[0, m*D + d]
    x = x_ref[...]                                          # (tile_n, D)
    tile_m = w_ref.shape[-1] // x_ref.shape[-1]
    x_rep = jnp.tile(x, (1, tile_m))                        # (tile_n, tile_m*D)
    o_ref[...] = (x_rep * w_ref[...]).astype(o_ref.dtype)


def custom_weight_forward(X, weight, *, tile_n=None, tile_m=None, out_dtype=None):
    """X: (timesteps, batch, d_hidden); weight: (1, mp_dim, d_hidden).

    Returns (timesteps, batch, mp_dim, d_hidden), matching the PyTorch
    module's broadcasted elementwise multiply.
    """
    timesteps = X.shape[0]
    d_hidden = X.shape[-1]
    assert weight.ndim == 3 and weight.shape[0] == 1 and weight.shape[2] == d_hidden
    mp_dim = weight.shape[1]
    out_dtype = X.dtype if out_dtype is None else jnp.dtype(out_dtype)

    x2d = X.reshape(-1, d_hidden)                           # (N, D) — free view
    N = x2d.shape[0]
    w_flat = weight.reshape(1, mp_dim * d_hidden)           # row-major flatten

    out_item = jnp.dtype(out_dtype).itemsize
    sub = max(_sublane(x2d.dtype), _sublane(out_dtype))

    # ---- hardware-aware budgets --------------------------------------------
    try:
        vmem_cap = pltpu.get_tpu_info().vmem_capacity_bytes
    except Exception:
        vmem_cap = 128 * 1024 * 1024
    big_vmem = vmem_cap >= 96 * 1024 * 1024                 # v5e / v6e (1 TC)
    target_out_bytes = (8 if big_vmem else 4) * 1024 * 1024
    # Single-TC parts only need ~3 steps for output-writeback pipelining;
    # v7x (2 TCs) wants >= 4 so the "parallel" axes shard across both cores.
    min_steps = 3 if big_vmem else 4

    # ---- mp_dim tiling (only for very large rows) ---------------------------
    per_m_bytes = d_hidden * out_item
    row_bytes = mp_dim * per_m_bytes
    if tile_m is None:
        if row_bytes <= target_out_bytes:
            tile_m = mp_dim
        else:
            # Tile the flat lane axis; lane blocks must stay multiples of 128.
            m_quant = 1 if d_hidden % 128 == 0 else 128 // math.gcd(d_hidden, 128)
            want_m = max(1, target_out_bytes // (sub * per_m_bytes))
            tile_m = max(m_quant, want_m // m_quant * m_quant)
            tile_m = min(tile_m, mp_dim)
            if tile_m < mp_dim and (tile_m * d_hidden) % 128 != 0:
                # Can't tile lanes legally; fall back to full rows (rare).
                tile_m = mp_dim
    else:
        tile_m = min(tile_m, mp_dim)
        if tile_m < mp_dim and (tile_m * d_hidden) % 128 != 0:
            raise ValueError(
                "tile_m * d_hidden must be a multiple of 128 when tile_m < mp_dim"
            )
    tile_f = tile_m * d_hidden
    grid_m = _cdiv(mp_dim, tile_m)

    # ---- row tiling ----------------------------------------------------------
    if tile_n is None:
        row_tile_bytes = tile_f * out_item
        budget_rows = max(sub, target_out_bytes // row_tile_bytes // sub * sub)
        steps_rows = _round_up(_cdiv(N, min_steps), sub)
        tile_n = max(sub, min(budget_rows, steps_rows, _round_up(N, sub)))
    else:
        if tile_n % sub != 0:
            raise ValueError(f"tile_n must be a multiple of {sub}; got {tile_n}")
    grid_n = _cdiv(N, tile_n)

    # ---- VMEM limit from the real (padded, double-buffered) footprint -------
    footprint = 2 * (
        _padded_tile_bytes(tile_n, d_hidden, x2d.dtype)
        + _padded_tile_bytes(tile_n, tile_f, out_dtype)
        + _padded_tile_bytes(1, tile_f, w_flat.dtype)
    )
    vmem_limit = int(
        min(max(2 * footprint, footprint + 2 * 1024 * 1024, 16 * 1024 * 1024),
            vmem_cap * 0.92)
    )
    # TODO(synk): in the extreme corner where the footprint still approaches
    # physical VMEM (huge mp_dim*d_hidden with non-128-aligned d_hidden), the
    # output spec could additionally use pipeline_mode=pl.Buffered(1).

    kernel = _kernel_chunked if d_hidden % 128 == 0 else _kernel_replicate

    out2d = pl.pallas_call(
        kernel,
        out_shape=jax.ShapeDtypeStruct((N, mp_dim * d_hidden), out_dtype),
        grid_spec=pltpu.PrefetchScalarGridSpec(
            num_scalar_prefetch=0,
            grid=(grid_n, grid_m),
            in_specs=[
                pl.BlockSpec((tile_n, d_hidden), lambda i, j: (i, 0)),
                pl.BlockSpec((1, tile_f), lambda i, j: (0, j)),
            ],
            out_specs=pl.BlockSpec((tile_n, tile_f), lambda i, j: (i, j)),
        ),
        compiler_params=pltpu.CompilerParams(
            dimension_semantics=("parallel", "parallel"),
            vmem_limit_bytes=vmem_limit,
        ),
    )(x2d, w_flat)

    return out2d.reshape(timesteps, -1, mp_dim, d_hidden)


def xavier_uniform(key, shape, dtype=jnp.float32):
    # Matches torch.nn.init.xavier_uniform for a (1, mp_dim, d_hidden) tensor:
    # fan_in  = shape[1] * prod(shape[2:]),  fan_out = shape[0] * prod(shape[2:])
    receptive = 1
    for s in shape[2:]:
        receptive *= s
    fan_in = shape[1] * receptive
    fan_out = shape[0] * receptive
    bound = math.sqrt(6.0 / (fan_in + fan_out))
    return jax.random.uniform(key, shape, dtype, minval=-bound, maxval=bound)


def _reference(X, weight):
    d_hidden = X.shape[-1]
    mp_dim = weight.shape[1]
    return (X.reshape(-1, 1, d_hidden) * weight).reshape(
        X.shape[0], -1, mp_dim, d_hidden
    )


if __name__ == "__main__":
    key = jax.random.PRNGKey(0)

    # Config A: small d_hidden (< 128, not lane-aligned) -> replicate kernel.
    timesteps, batch, d_hidden, mp_dim = 8, 2, 32, 4
    kx, kw, key = jax.random.split(key, 3)
    X = jax.random.normal(kx, (timesteps, batch, d_hidden), dtype=jnp.float32)
    W = xavier_uniform(kw, (1, mp_dim, d_hidden), dtype=jnp.float32)
    out = jax.block_until_ready(custom_weight_forward(X, W))
    assert out.shape == (timesteps, batch, mp_dim, d_hidden)
    assert jnp.allclose(out, _reference(X, W), atol=1e-6, rtol=1e-6)

    # Config B: d_hidden % 128 == 0 -> chunked kernel; N = 12 exercises the
    # ragged last row tile (no host-side pad/slice anymore).
    timesteps, batch, d_hidden, mp_dim = 4, 3, 128, 2
    kx, kw, key = jax.random.split(key, 3)
    X = jax.random.normal(kx, (timesteps, batch, d_hidden), dtype=jnp.float32)
    W = xavier_uniform(kw, (1, mp_dim, d_hidden), dtype=jnp.float32)
    out = jax.block_until_ready(custom_weight_forward(X, W))
    assert out.shape == (timesteps, batch, mp_dim, d_hidden)
    assert jnp.allclose(out, _reference(X, W), atol=1e-6, rtol=1e-6)

    # Config C: explicit tile_m < mp_dim exercises the 2-axis (rows, mp) grid
    # used for the large-row regime.
    timesteps, batch, d_hidden, mp_dim = 2, 8, 128, 4
    kx, kw, key = jax.random.split(key, 3)
    X = jax.random.normal(kx, (timesteps, batch, d_hidden), dtype=jnp.float32)
    W = xavier_uniform(kw, (1, mp_dim, d_hidden), dtype=jnp.float32)
    out = jax.block_until_ready(custom_weight_forward(X, W, tile_m=2))
    assert out.shape == (timesteps, batch, mp_dim, d_hidden)
    assert jnp.allclose(out, _reference(X, W), atol=1e-6, rtol=1e-6)

    print("KERNEL_OK")
</pallas_src>

<mosaic_0001>
module attributes {stable_mosaic.version = 11 : i64} {
  func.func @_kernel_replicate(%arg0: i32, %arg1: i32, %arg2: memref<8x32xf32, #tpu.memory_space<vmem>>, %arg3: memref<1x128xf32, #tpu.memory_space<vmem>>, %arg4: memref<8x128xf32, #tpu.memory_space<vmem>>) attributes {dimension_semantics = [#tpu.dimension_semantics<parallel>, #tpu.dimension_semantics<parallel>], iteration_bounds = array<i64: 2, 1>, scalar_prefetch = 0 : i64, scratch_operands = 0 : i64, tpu.core_type = #tpu.core_type<tc>, window_params = [{transform_indices = @transform_0, window_bounds = array<i64: 8, 32>}, {transform_indices = @transform_1, window_bounds = array<i64: 1, 128>}, {transform_indices = @transform_2, window_bounds = array<i64: 8, 128>}]} {
    %c0 = arith.constant 0 : index
    %c0_0 = arith.constant 0 : index
    %0 = vector.load %arg2[%c0, %c0_0] : memref<8x32xf32, #tpu.memory_space<vmem>>, vector<8x32xf32>
    %1 = tpu.concatenate %0, %0, %0, %0 in 1 : vector<8x32xf32>, vector<8x32xf32>, vector<8x32xf32>, vector<8x32xf32> -> vector<8x128xf32>
    %c0_1 = arith.constant 0 : index
    %c0_2 = arith.constant 0 : index
    %2 = vector.load %arg3[%c0_1, %c0_2] : memref<1x128xf32, #tpu.memory_space<vmem>>, vector<1x128xf32>
    %3 = vector.broadcast %2 : vector<1x128xf32> to vector<8x128xf32>
    %4 = arith.mulf %1, %3 : vector<8x128xf32>
    %c0_3 = arith.constant 0 : index
    %c0_4 = arith.constant 0 : index
    %5 = vector.load %arg4[%c0_3, %c0_4] : memref<8x128xf32, #tpu.memory_space<vmem>>, vector<8x128xf32>
    tpu.vector_store %arg4[%c0_3, %c0_4], %4 {strides = array<i32>} : memref<8x128xf32, #tpu.memory_space<vmem>>, vector<8x128xf32>,
    return
  }
  func.func @transform_0(%arg0: i32, %arg1: i32) -> (i32, i32) {
    %c0_i32 = arith.constant 0 : i32
    %c0_i32_0 = arith.constant 0 : i32
    return %arg0, %c0_i32 : i32, i32
  }
  func.func @transform_1(%arg0: i32, %arg1: i32) -> (i32, i32) {
    %c0_i32 = arith.constant 0 : i32
    %c0_i32_0 = arith.constant 0 : i32
    return %c0_i32, %arg1 : i32, i32
  }
  func.func @transform_2(%arg0: i32, %arg1: i32) -> (i32, i32) {
    %c0_i32 = arith.constant 0 : i32
    return %arg0, %arg1 : i32, i32
  }
}

</mosaic_0001>

<bundles_post_ra>
// kernel: tpu_custom_call.1
= control target key start
LH: loop header
LB: loop body
LE: loop exit
PB: predicated region body
PF: predicated region fallthrough
CT: control target
= control target key end

     0   :  { %7 = vsyncpa [#allocation3], 0  ;;  %s666_s0 = inlined_call_operand.hbm [shape: f32[16,32], index: 0, kind: input, shape index: {}]   ;;  %s667_s1 = inlined_call_operand.vmem [shape: f32[1,128], index: 1, kind: input, shape index: {}]   ;;  %s668_s2 = inlined_call_operand.hbm [shape: f32[16,128], index: 2, kind: output, shape index: {}]  }
   0x1   :  { %9 = vsyncpa [#allocation3 + $0x1], 0 }
   0x2   :  { %10 = vsyncpa [#allocation4], 0 }
   0x3   :  { %12 = vsyncpa [#allocation4 + $0x1], 0  ;;  %s529_s9 = smov 0   ;;  %s531_s10 = smov 0  }
   0x4   :  { %s533_s11 = smov 0   ;;  %s535_s12 = smov 0  }
   0x5   :  { %s537_s13 = smov 0   ;;  %s539_s14 = smov 0  }
   0x6 LB: > { %s319_s15 = sadd.s32 4294967295, %s507_s14   ;;  %s320_s16 = sadd.s32 4294967294, %s507_s14   ;;  %s507_s14 = sphi %s539_s14, %s18_s14   ;;  %s503_s13 = sphi %s537_s13, %s680_s13   ;;  %s499_s12 = sphi %s535_s12, %s679_s12   ;;  %s495_s11 = sphi %s533_s11, %s678_s11   ;;  %s491_s10 = sphi %s531_s10, %s677_s10   ;;  %s487_s9 = sphi %s529_s9, %s676_s9  }
   0x7   : > { %s30_s17 = sadd.s32 1, %s503_s13  ;;  %s37_s18 = sadd.s32 1, %s495_s11 }
   0x8   : > { %p32_p0 = scmp.ge.s32.totalorder %s30_s17, 2  ;;  %p44_p1 = scmp.ne.s32.totalorder %s495_s11, %s491_s10 }
   0x9   : > { %p45_p2 = scmp.eq.s32.totalorder %s507_s14, 0  ;;  %p50_p3 = scmp.ne.s32.totalorder %s491_s10, %s487_s9 }
   0xa   : > { %s682_s17 = smov (%p32_p0, %s30_s17), 0  ;;  %p51_p5 = scmp.eq.s32.totalorder %s319_s15, 0 }
   0xb   : > { %p570_p4 = por %p45_p2, %p44_p1  ;;  %s34_s20 = ssub.s32 %s503_s13, %s682_s17 }
   0xc   : > { %p102_p6 = scmp.eq.s32.totalorder %s319_s15, 1  ;;  %p35_p7 = scmp.eq.s32.totalorder %s34_s20, 0 }
   0xd   : > { %p576_p8 = por %p51_p5, %p50_p3  ;;  %p108_p10 = scmp.eq.s32.totalorder %s320_s16, 1 }
   0xe   : > { %p580_p9 = por %p102_p6, %p44_p1  ;;  %p346_p13 = scmp.lt.s32.totalorder %s507_s14, 2 }
   0xf   : > { %s585_s23 = scalar_select %p35_p7, %s495_s11, %s37_s18  }
  0x10   : > { %p587_p11 = por %p108_p10, %p50_p3  ;;  %s134_s25 = sand.u32 1, %s495_s11  }
  0x11   : > { %s324_s26 = sshll.u32 %s134_s25, 3  ;;  %s325_s27 = sshll.u32 %s503_s13, 7 }
  0x12   : > { %s672_s24 = scalar_select %p587_p11, 1, 0 }
  0x13   : > { %s143_s30 = scalar_lea.hbm %s666_s0, %s325_s27  ;;  %s138_s3 = scalar_lea.vmem [#allocation2], %s324_s26 }
  0x14   : > { %s145_s4 = sshll.u32 %s138_s3, 4  ;;  %p600_p0 = pnand %p346_p13, %p570_p4  ;;  %s146_s4 = int_to_ptr.vmem [resolvable:$true] %s145_s4 }
  0x15   : > { %p326_p1 = scmp.ge.s32.totalorder %s507_s14, 1  ;;  %p150_p2 = scmp.lt.s32.totalorder %s507_s14, 3 }
  0x16   : > { %s135_s6 = scalar_lea.sflag [#allocation3], %s134_s25  ;;  %p401_p3 = pneg %p600_p0 }
  0x17   : > { %s412_s7 = scalar_lea.vmem %s146_s4, 128  ;;  %s509_s8 = smov [#allocation2]  }
  0x18   : > { %p413_p5 = scmp.ne.s32.totalorder %s146_s4, %s412_s7  ;;  %s417_s15 = sshll.u32 %s509_s8, 4  ;;  %s418_s15 = int_to_ptr.vmem [resolvable:$false] %s417_s15 }
  0x19   : > { %s419_s16 = scalar_lea.vmem %s418_s15, 256  ;;  %p420_p10 = scmp.lt.s32.totalorder %s146_s4, %s418_s15 }
  0x1a   : > { %p415_p6 = pnand %p413_p5, %p401_p3  ;;  %p421_p12 = scmp.lt.s32.totalorder %s419_s16, %s412_s7 }
  0x1c   : > { %p416_p7 = pneg %p415_p6  ;;  %p422_p4 = por %p421_p12, %p420_p10 }
  0x1e   : > { %p423_p13 = pnand %p422_p4, %p416_p7 }
  0x20   : > { %426 = shalt.err (!%p423_p13)
}
  0x21   : > { %341 = dma.hbm_to_vmem [thread:$0]  (!%p600_p0), %s143_s30, 128, %s146_s4, %s135_s6  }
  0x22   : > { %p151_p11 = pnand %p326_p1, %p150_p2 }
  0x23   : > { %s615_s18 = sand.u32 (!%p151_p11), 1, %s491_s10  }
  0x24   : > { %154 = sbr.rel (%p151_p11) target bundleno = 179 (0xb3), region = 28  ;;  %s327_s19 = sshll.u32 (!%p151_p11), %s615_s18, 3 }
  0x25   : > { %s157_s20 = scalar_lea.sflag (!%p151_p11), [#allocation3], %s615_s18  ;;  %s160_s25 = scalar_lea.vmem (!%p151_p11), [#allocation2], %s327_s19 }
  0x29   : > { %478 = dma.done.wait (%p576_p8), %s157_s20, 128  }
  0x2a   : > { %480 = vsyncadd (%p576_p8), %s157_s20, 4294967168  ;;  %v187_v0 = vld [vmem:[%s160_s25] sm:$0xff]  ;;  %s510_s26 = smov 32   ;;  %s511_s27 = smov 96   ;;  %vm198_vm0 = vcmask 261120   ;;  %vm200_vm1 = vcmask 523264  }
  0x2b   : > { %189 = vrot.lane.b32.xlu0 %v187_v0, %s510_s26  ;;  %195 = vrot.lane.b32.xlu1 %v187_v0, %s511_s27  ;;  %s512_s28 = smov 64   ;;  %vm202_vm2 = vcmask 785408   ;;  %v329_v5 = vld [vmem:[%s667_s1] ss:$0 sm:$0xff]  ;;  %s331_s30 = sshll.u32 %s499_s12, 7 }
  0x2c   : > { %s183_s3 = scalar_lea.vmem [#allocation5], %s327_s19  ;;  %s226_s7 = scalar_lea.hbm %s668_s2, %s331_s30 }
  0x2d   : > { %s228_s4 = sshll.u32 %s183_s3, 4  ;;  %s214_s8 = scalar_lea.sflag [#allocation4], %s615_s18  ;;  %s229_s4 = int_to_ptr.vmem [resolvable:$true] %s228_s4 }
  0x2e   : > { %s427_s15 = scalar_lea.vmem %s229_s4, 128  ;;  %s513_s16 = smov [#allocation5]  }
  0x2f   : > { %192 = vrot.lane.b32.xlu0 %v187_v0, %s512_s28  ;;  %p428_p8 = scmp.ne.s32.totalorder %s229_s4, %s427_s15  ;;  %s431_s20 = sshll.u32 %s513_s16, 4  ;;  %s432_s20 = int_to_ptr.vmem [resolvable:$false] %s431_s20 }
  0x30   : > { %s433_s12 = scalar_lea.vmem %s432_s20, 256  ;;  %p434_p0 = scmp.lt.s32.totalorder %s229_s4, %s432_s20 }
  0x31   : > { %p429_p11 = pnand %p428_p8, %p580_p9  ;;  %p435_p1 = scmp.lt.s32.totalorder %s433_s12, %s427_s15 }
  0x33   : > { %p430_p12 = pneg %p429_p11  ;;  %p436_p2 = por %p435_p1, %p434_p0 }
  0x35   : > { %p437_p3 = pnand %p436_p2, %p430_p12 }
  0x9d   : > { %v190_v1 = vpop.permute.xlu0 %189  ;;  %v196_v2 = vpop.permute.xlu1 %195 }
  0x9e   : > { %v199_v3 = vsel %vm198_vm0, %v187_v0, %v190_v1 }
  0xa1   : > { %v193_v4 = vpop.permute.xlu0 %192 }
  0xa2   : > { %v201_v6 = vsel %vm200_vm1, %v199_v3, %v193_v4 }
  0xa3   : > { %v203_v7 = vsel %vm202_vm2, %v201_v6, %v196_v2 }
  0xa4   : > { %v211_v8 = vmul.f32 %v329_v5, %v203_v7 }
  0xa6   : > { %212 = vst [vmem:[%s183_s3] sm:$0xff] %v211_v8 }
  0xa7   : > { %440 = shalt.err (!%p437_p3)
}
  0xa8   : > { %s441_s19 = scalar_lea.hbm %s226_s7, 128  ;;  %s445_s26 = scalar_lea.hbm %s668_s2, 256 }
  0xa9   : > { %p442_p5 = scmp.ne.s32.totalorder %s226_s7, %s441_s19  ;;  %p446_p10 = scmp.lt.s32.totalorder %s226_s7, %s668_s2 }
  0xaa   : > { %p447_p4 = scmp.lt.s32.totalorder %s445_s26, %s441_s19 }
  0xab   : > { %p443_p6 = pnand %p442_p5, %p580_p9 }
  0xac   : > { %p448_p13 = por %p447_p4, %p446_p10 }
  0xad   : > { %p444_p7 = pneg %p443_p6 }
  0xaf   : > { %p449_p8 = pnand %p448_p13, %p444_p7 }
  0xb1   : > { %452 = shalt.err (!%p449_p8)
}
  0xb2   : > { %336 = dma.vmem_to_hbm [thread:$0]  (%p580_p9), %s229_s4, 128, %s226_s7, %s214_s8  }
  0xb3 PF: > { %s240_s29 = sand.u32 1, %s487_s9   ;;  %p674_p11 = scmp.ne.s32.totalorder %s672_s24, 0 }
  0xb4   : > { %p675_p12 = scmp.ge.s32.totalorder %s507_s14, 2  ;;  %s241_s21 = scalar_lea.sflag [#allocation4], %s240_s29 }
  0xb6   : > { %p343_p0 = pnand %p675_p12, %p674_p11 }
  0xb8   : > { %p344_p1 = pneg %p343_p0 }
  0xba   : > { %482 = dma.done.wait (%p344_p1), %s241_s21, 128  }
  0xbb   : > { %484 = vsyncadd (%p344_p1), %s241_s21, 4294967168  ;;  %s18_s14 = sadd.s32 1, %s507_s14   ;;  %s676_s9 = smov %s491_s10 }
  0xbc   : > { %p15_p2 = scmp.ge.s32.totalorder %s18_s14, 4   ;;  %s677_s10 = smov %s495_s11 }
  0xbd   : > { %s678_s11 = smov %s585_s23  ;;  %s679_s12 = smov %s503_s13 }
  0xbe   : > { %s680_s13 = smov %s682_s17  ;;  %17 = sbr.rel (!%p15_p2) target bundleno = 6 (0x6), region = 76 }
  0xc3   :  { %246 = vsyncpa [#allocation3], 1 }
  0xc4   :  { %248 = vsyncpa [#allocation3 + $0x1], 1 }
  0xc5   :  { %249 = vsyncpa [#allocation4], 1 }
  0xc6   :  { %251 = vsyncpa [#allocation4 + $0x1], 1 }

</bundles_post_ra>
